<compile_context>
chip_gen: v7x
topology: tpu7x:2x2x1
jax: 0.10.0
libtpu: 0.0.40
codegen_flags: <defaults>
</compile_context>

<pallas_src>
from functools import partial

import jax
import jax.numpy as jnp
from jax.experimental import pallas as pl
from jax.experimental.pallas import tpu as pltpu


def siamese_lstm_kernel(ids_ref, embwih_ref, whh_ref, bias_ref, w12_ref, b12_ref,
                        out_ref, xproj_ref, *, seq_len, batch_pad, hidden_dim):
    T, Bp, H = seq_len, batch_pad, hidden_dim
    Vp = embwih_ref.shape[0]                     # vocab padded to lane multiple (128)

    # ---- Fused embedding gather + input projection (all gates, all steps). ----
    # onehot(ids) @ (embedding @ W_ih) + b  ->  (T*Bp, 4H) f32, one MXU push,
    # one unmasked lane-dense scratch store.
    ids = ids_ref[...]                                            # (T*Bp, 1) int32
    lane = jax.lax.broadcasted_iota(jnp.int32, (T * Bp, Vp), 1)   # (T*Bp, Vp)
    onehot = (lane == ids).astype(jnp.bfloat16)                   # exact 0/1 selector
    xproj_ref[...] = (
        jnp.dot(onehot, embwih_ref[...], preferred_element_type=jnp.float32)
        + bias_ref[...])                                          # (T*Bp, 4H) f32

    # Recurrent weights loaded once (live in vregs across the unrolled loop).
    whh = whh_ref[...]                                            # (H, 4H) bf16

    # ---- Serial LSTM recurrence (gate order i, f, g, o as in PyTorch). ----
    # One (Bp, H) x (H, 4H=128) MXU push per step; gates split by static lane
    # slices of the (Bp, 128) result.
    def step(t, carry):
        h, c = carry
        row = pl.multiple_of(t * Bp, 8)                           # sublane-aligned
        gates = xproj_ref[pl.ds(row, Bp), :] + jnp.dot(
            h.astype(jnp.bfloat16), whh, preferred_element_type=jnp.float32)
        i_g = jax.nn.sigmoid(gates[:, 0 * H:1 * H])
        f_g = jax.nn.sigmoid(gates[:, 1 * H:2 * H])
        g_g = jnp.tanh(gates[:, 2 * H:3 * H])
        o_g = jax.nn.sigmoid(gates[:, 3 * H:4 * H])
        c_new = f_g * c + i_g * g_g
        h_new = o_g * jnp.tanh(c_new)
        return (h_new, c_new)

    h0 = jnp.zeros((Bp, H), jnp.float32)
    c0 = jnp.zeros((Bp, H), jnp.float32)
    h, _ = jax.lax.fori_loop(0, T, step, (h0, c0), unroll=True)

    # ---- Collapsed head: sigmoid(h @ (w1.T @ w2.T) + b12) as a VPU reduce. ----
    z = jnp.sum(h * w12_ref[...], axis=-1, keepdims=True) + b12_ref[...]   # (Bp, 1)
    out_ref[...] = jnp.broadcast_to(jax.nn.sigmoid(z), out_ref.shape)


def siamese_forward_pallas(input1, input2, params):
    """Runs both siamese branches fused in a single Pallas kernel call."""
    H = params["hidden_dim"]
    B = input1.shape[0]
    ids = jnp.concatenate([input1, input2], axis=0)       # (2B, T)
    B2, T = ids.shape
    Bp = ((B2 + 7) // 8) * 8                              # pad batch to sublane multiple

    # Only a tiny int32 transpose/pad stays in the wrapper; the float embedding
    # gather + cast now happens inside the kernel.  Padded rows gather token 0
    # and are sliced off below (never enter any batch-wise reduction).
    ids_tm = jnp.transpose(ids)                           # (T, 2B) int32, ~bytes
    if Bp != B2:
        ids_tm = jnp.pad(ids_tm, ((0, 0), (0, Bp - B2)))
    ids_flat = ids_tm.reshape(T * Bp, 1).astype(jnp.int32)   # time-major flattened

    kernel = partial(siamese_lstm_kernel, seq_len=T, batch_pad=Bp, hidden_dim=H)
    # Grid-less call: total VMEM footprint is ~150 KiB, far under every
    # generation's budget, so no vmem_limit override is needed.
    # TODO(synk): once B2 >= 16, add a leading batch grid axis with
    # dimension_semantics=("parallel",) so v7x's two TensorCores split the
    # batch; at B2=4 a grid would be pure overhead.
    out = pl.pallas_call(
        kernel,
        out_shape=jax.ShapeDtypeStruct((Bp, 128), jnp.float32),
        in_specs=[pl.BlockSpec(memory_space=pltpu.MemorySpace.VMEM)] * 6,
        out_specs=pl.BlockSpec(memory_space=pltpu.MemorySpace.VMEM),
        scratch_shapes=[pltpu.VMEM((T * Bp, 4 * H), jnp.float32)],
    )(ids_flat, params["embwih_g"], params["whh_p"], params["bias_p"],
      params["w12"], params["b12"])

    probs = out[:B2, 0:1]                                 # (2B, 1): drop pads
    return probs[:B], probs[B:]


def init_params(key, vocab_size, embedding_dim, hidden_dim):
    ks = jax.random.split(key, 8)
    E, H = embedding_dim, hidden_dim
    scale = 0.1
    emb = jax.random.normal(ks[0], (vocab_size, E), jnp.float32) * scale
    w_ih = jax.random.normal(ks[1], (4 * H, E), jnp.float32) * scale   # PyTorch shape
    w_hh = jax.random.normal(ks[2], (4 * H, H), jnp.float32) * scale
    b_ih = jax.random.normal(ks[3], (4 * H,), jnp.float32) * scale
    b_hh = jax.random.normal(ks[4], (4 * H,), jnp.float32) * scale
    w1 = jax.random.normal(ks[5], (64, H), jnp.float32) * scale        # fc1
    b1 = jax.random.normal(ks[6], (64,), jnp.float32) * scale
    w2 = jax.random.normal(ks[7], (1, 64), jnp.float32) * scale        # fc2
    b2 = jnp.array([0.05], jnp.float32)

    # f32 master copies (used by the pure-JAX reference).
    w_ih_t = w_ih.T                                       # (E, 4H)
    w_hh_t = w_hh.T                                       # (H, 4H)
    b_gates = (b_ih + b_hh).reshape(1, 4 * H)
    w1_t = w1.T                                           # (H, 64)
    w2_t = w2.T                                           # (64, 1)

    # ---- Kernel-packed operands (gates packed along the 4H=128 lane axis). ----
    # Embedding gather folded into the input projection: emb @ W_ih^T computed
    # once at init (weight-only, exact), rows padded to a 128-lane-friendly
    # vocab so the in-kernel one-hot matmul is a single full-width MXU push.
    # TODO(synk): for a large vocab this fold/one-hot is not viable; use an
    # in-kernel DMA row gather of the embedding table instead.
    Vp = ((vocab_size + 127) // 128) * 128
    emb_wih = emb @ w_ih_t                                # (vocab, 4H) f32
    embwih_g = jnp.zeros((Vp, 4 * H), jnp.float32).at[:vocab_size].set(
        emb_wih).astype(jnp.bfloat16)                     # (Vp, 4H) bf16
    whh_p = w_hh_t.astype(jnp.bfloat16)                   # (H, 4H) bf16
    bias_p = b_gates                                      # (1, 4H) f32
    # fc1 @ fc2 collapsed (no nonlinearity between them in the module).
    w12 = (w1_t @ w2_t).T                                 # (1, H) f32
    b12 = b1.reshape(1, 64) @ w2_t + b2.reshape(1, 1)     # (1, 1) f32

    return {
        "hidden_dim": H,
        "embedding": emb,
        # reference params
        "w_ih_t": w_ih_t, "w_hh_t": w_hh_t, "b_gates": b_gates,
        "w1_t": w1_t, "b1": b1.reshape(1, 64), "w2_t": w2_t, "b2": b2.reshape(1, 1),
        # kernel params
        "embwih_g": embwih_g, "whh_p": whh_p, "bias_p": bias_p,
        "w12": w12, "b12": b12,
    }


def forward_one_ref(ids, params):
    # Pure-JAX f32 reference of the PyTorch forward_one (for validation).
    emb = jnp.take(params["embedding"], ids, axis=0)      # (B, T, E)
    B, T, E = emb.shape
    H = params["hidden_dim"]
    h = jnp.zeros((B, H), jnp.float32)
    c = jnp.zeros((B, H), jnp.float32)
    for t in range(T):
        gates = emb[:, t, :] @ params["w_ih_t"] + h @ params["w_hh_t"] + params["b_gates"]
        i = jax.nn.sigmoid(gates[:, 0 * H:1 * H])
        f = jax.nn.sigmoid(gates[:, 1 * H:2 * H])
        g = jnp.tanh(gates[:, 2 * H:3 * H])
        o = jax.nn.sigmoid(gates[:, 3 * H:4 * H])
        c = f * c + i * g
        h = o * jnp.tanh(c)
    z = h @ params["w1_t"] + params["b1"]
    z = z @ params["w2_t"] + params["b2"]
    return jax.nn.sigmoid(z)


if __name__ == "__main__":
    vocab_size, embedding_dim, hidden_dim = 50, 16, 32
    batch, seq = 2, 8

    key = jax.random.PRNGKey(0)
    k_params, k_in1, k_in2 = jax.random.split(key, 3)
    params = init_params(k_params, vocab_size, embedding_dim, hidden_dim)

    input1 = jax.random.randint(k_in1, (batch, seq), 0, vocab_size, jnp.int32)
    input2 = jax.random.randint(k_in2, (batch, seq), 0, vocab_size, jnp.int32)

    out1, out2 = siamese_forward_pallas(input1, input2, params)
    out1, out2 = jax.block_until_ready((out1, out2))

    ref1 = forward_one_ref(input1, params)
    ref2 = forward_one_ref(input2, params)
    assert out1.shape == (batch, 1) and out2.shape == (batch, 1)
    assert jnp.allclose(out1, ref1, atol=2e-3, rtol=2e-3), (out1, ref1)
    assert jnp.allclose(out2, ref2, atol=2e-3, rtol=2e-3), (out2, ref2)

    print("KERNEL_OK")
</pallas_src>

<mosaic_0001>
module attributes {stable_mosaic.version = 11 : i64} {
  func.func @siamese_lstm_kernel(%arg0: memref<64x1xi32, #tpu.memory_space<vmem>>, %arg1: memref<128x128xbf16, #tpu.memory_space<vmem>>, %arg2: memref<32x128xbf16, #tpu.memory_space<vmem>>, %arg3: memref<1x128xf32, #tpu.memory_space<vmem>>, %arg4: memref<1x32xf32, #tpu.memory_space<vmem>>, %arg5: memref<1x1xf32, #tpu.memory_space<vmem>>, %arg6: memref<8x128xf32, #tpu.memory_space<vmem>>, %arg7: memref<64x128xf32, #tpu.memory_space<vmem>>) attributes {dimension_semantics = [], scalar_prefetch = 0 : i64, scratch_operands = 1 : i64, tpu.core_type = #tpu.core_type<tc>} {
    %c0 = arith.constant 0 : index
    %c0_0 = arith.constant 0 : index
    %0 = vector.load %arg0[%c0, %c0_0] : memref<64x1xi32, #tpu.memory_space<vmem>>, vector<64x1xi32>
    %1 = tpu.iota {dimensions = array<i32: 1>} : vector<64x128xi32>
    %2 = vector.broadcast %0 : vector<64x1xi32> to vector<64x128xi32>
    %3 = arith.cmpi eq, %1, %2 : vector<64x128xi32>
    %4 = arith.extui %3 : vector<64x128xi1> to vector<64x128xi32>
    %5 = arith.sitofp %4 : vector<64x128xi32> to vector<64x128xf32>
    %6 = arith.truncf %5 : vector<64x128xf32> to vector<64x128xbf16>
    %c0_1 = arith.constant 0 : index
    %c0_2 = arith.constant 0 : index
    %7 = vector.load %arg1[%c0_1, %c0_2] : memref<128x128xbf16, #tpu.memory_space<vmem>>, vector<128x128xbf16>
    %cst = arith.constant dense<0.000000e+00> : vector<64x128xf32>
    %8 = tpu.matmul %6, %7, %cst {dimension_numbers = #tpu.dot_dimension_numbers<[1], [0], [0], [1], [0, 0, 1, 1], [], []>} : vector<64x128xbf16>, vector<128x128xbf16>, vector<64x128xf32> -> vector<64x128xf32>
    %c0_3 = arith.constant 0 : index
    %c0_4 = arith.constant 0 : index
    %9 = vector.load %arg3[%c0_3, %c0_4] : memref<1x128xf32, #tpu.memory_space<vmem>>, vector<1x128xf32>
    %10 = vector.broadcast %9 : vector<1x128xf32> to vector<64x128xf32>
    %11 = arith.addf %8, %10 : vector<64x128xf32>
    %c0_5 = arith.constant 0 : index
    %c0_6 = arith.constant 0 : index
    %12 = vector.load %arg7[%c0_5, %c0_6] : memref<64x128xf32, #tpu.memory_space<vmem>>, vector<64x128xf32>
    tpu.vector_store %arg7[%c0_5, %c0_6], %11 {strides = array<i32>} : memref<64x128xf32, #tpu.memory_space<vmem>>, vector<64x128xf32>,
    %c0_7 = arith.constant 0 : index
    %c0_8 = arith.constant 0 : index
    %13 = vector.load %arg2[%c0_7, %c0_8] : memref<32x128xbf16, #tpu.memory_space<vmem>>, vector<32x128xbf16>
    %cst_9 = arith.constant 0.000000e+00 : f32
    %14 = vector.broadcast %cst_9 : f32 to vector<8x32xf32>
    %cst_10 = arith.constant 0.000000e+00 : f32
    %15 = vector.broadcast %cst_10 : f32 to vector<8x32xf32>
    %c0_i32 = arith.constant 0 : i32
    %c8_i32 = arith.constant 8 : i32
    %16 = arith.muli %c0_i32, %c8_i32 : i32
    %17 = tpu.assume_multiple %16, 8 : i32
    %18 = arith.index_cast %17 : i32 to index
    %c0_11 = arith.constant 0 : index
    %19 = vector.load %arg7[%18, %c0_11] : memref<64x128xf32, #tpu.memory_space<vmem>>, vector<8x128xf32>
    %20 = arith.truncf %14 : vector<8x32xf32> to vector<8x32xbf16>
    %cst_12 = arith.constant dense<0.000000e+00> : vector<8x128xf32>
    %21 = tpu.matmul %20, %13, %cst_12 {dimension_numbers = #tpu.dot_dimension_numbers<[1], [0], [0], [1], [0, 0, 1, 1], [], []>} : vector<8x32xbf16>, vector<32x128xbf16>, vector<8x128xf32> -> vector<8x128xf32>
    %22 = arith.addf %19, %21 : vector<8x128xf32>
    %23 = vector.extract_strided_slice %22 {offsets = [0, 0], sizes = [8, 32], strides = [1, 1]} : vector<8x128xf32> to vector<8x32xf32>
    %24 = arith.negf %23 : vector<8x32xf32>
    %25 = math.exp %24 : vector<8x32xf32>
    %cst_13 = arith.constant 1.000000e+00 : f32
    %26 = vector.broadcast %cst_13 : f32 to vector<8x32xf32>
    %27 = arith.addf %26, %25 : vector<8x32xf32>
    %28 = arith.divf %26, %27 : vector<8x32xf32>
    %29 = vector.extract_strided_slice %22 {offsets = [0, 32], sizes = [8, 32], strides = [1, 1]} : vector<8x128xf32> to vector<8x32xf32>
    %30 = arith.negf %29 : vector<8x32xf32>
    %31 = math.exp %30 : vector<8x32xf32>
    %cst_14 = arith.constant 1.000000e+00 : f32
    %32 = vector.broadcast %cst_14 : f32 to vector<8x32xf32>
    %33 = arith.addf %32, %31 : vector<8x32xf32>
    %34 = arith.divf %32, %33 : vector<8x32xf32>
    %35 = vector.extract_strided_slice %22 {offsets = [0, 64], sizes = [8, 32], strides = [1, 1]} : vector<8x128xf32> to vector<8x32xf32>
    %36 = math.tanh %35 : vector<8x32xf32>
    %37 = vector.extract_strided_slice %22 {offsets = [0, 96], sizes = [8, 32], strides = [1, 1]} : vector<8x128xf32> to vector<8x32xf32>
    %38 = arith.negf %37 : vector<8x32xf32>
    %39 = math.exp %38 : vector<8x32xf32>
    %cst_15 = arith.constant 1.000000e+00 : f32
    %40 = vector.broadcast %cst_15 : f32 to vector<8x32xf32>
    %41 = arith.addf %40, %39 : vector<8x32xf32>
    %42 = arith.divf %40, %41 : vector<8x32xf32>
    %43 = arith.mulf %34, %15 : vector<8x32xf32>
    %44 = arith.mulf %28, %36 : vector<8x32xf32>
    %45 = arith.addf %43, %44 : vector<8x32xf32>
    %46 = math.tanh %45 : vector<8x32xf32>
    %47 = arith.mulf %42, %46 : vector<8x32xf32>
    %c1_i32 = arith.constant 1 : i32
    %c8_i32_16 = arith.constant 8 : i32
    %48 = arith.muli %c1_i32, %c8_i32_16 : i32
    %49 = tpu.assume_multiple %48, 8 : i32
    %50 = arith.index_cast %49 : i32 to index
    %c0_17 = arith.constant 0 : index
    %51 = vector.load %arg7[%50, %c0_17] : memref<64x128xf32, #tpu.memory_space<vmem>>, vector<8x128xf32>
    %52 = arith.truncf %47 : vector<8x32xf32> to vector<8x32xbf16>
    %cst_18 = arith.constant dense<0.000000e+00> : vector<8x128xf32>
    %53 = tpu.matmul %52, %13, %cst_18 {dimension_numbers = #tpu.dot_dimension_numbers<[1], [0], [0], [1], [0, 0, 1, 1], [], []>} : vector<8x32xbf16>, vector<32x128xbf16>, vector<8x128xf32> -> vector<8x128xf32>
    %54 = arith.addf %51, %53 : vector<8x128xf32>
    %55 = vector.extract_strided_slice %54 {offsets = [0, 0], sizes = [8, 32], strides = [1, 1]} : vector<8x128xf32> to vector<8x32xf32>
    %56 = arith.negf %55 : vector<8x32xf32>
    %57 = math.exp %56 : vector<8x32xf32>
    %cst_19 = arith.constant 1.000000e+00 : f32
    %58 = vector.broadcast %cst_19 : f32 to vector<8x32xf32>
    %59 = arith.addf %58, %57 : vector<8x32xf32>
    %60 = arith.divf %58, %59 : vector<8x32xf32>
    %61 = vector.extract_strided_slice %54 {offsets = [0, 32], sizes = [8, 32], strides = [1, 1]} : vector<8x128xf32> to vector<8x32xf32>
    %62 = arith.negf %61 : vector<8x32xf32>
    %63 = math.exp %62 : vector<8x32xf32>
    %cst_20 = arith.constant 1.000000e+00 : f32
    %64 = vector.broadcast %cst_20 : f32 to vector<8x32xf32>
    %65 = arith.addf %64, %63 : vector<8x32xf32>
    %66 = arith.divf %64, %65 : vector<8x32xf32>
    %67 = vector.extract_strided_slice %54 {offsets = [0, 64], sizes = [8, 32], strides = [1, 1]} : vector<8x128xf32> to vector<8x32xf32>
    %68 = math.tanh %67 : vector<8x32xf32>
    %69 = vector.extract_strided_slice %54 {offsets = [0, 96], sizes = [8, 32], strides = [1, 1]} : vector<8x128xf32> to vector<8x32xf32>
    %70 = arith.negf %69 : vector<8x32xf32>
    %71 = math.exp %70 : vector<8x32xf32>
    %cst_21 = arith.constant 1.000000e+00 : f32
    %72 = vector.broadcast %cst_21 : f32 to vector<8x32xf32>
    %73 = arith.addf %72, %71 : vector<8x32xf32>
    %74 = arith.divf %72, %73 : vector<8x32xf32>
    %75 = arith.mulf %66, %45 : vector<8x32xf32>
    %76 = arith.mulf %60, %68 : vector<8x32xf32>
    %77 = arith.addf %75, %76 : vector<8x32xf32>
    %78 = math.tanh %77 : vector<8x32xf32>
    %79 = arith.mulf %74, %78 : vector<8x32xf32>
    %c2_i32 = arith.constant 2 : i32
    %c8_i32_22 = arith.constant 8 : i32
    %80 = arith.muli %c2_i32, %c8_i32_22 : i32
    %81 = tpu.assume_multiple %80, 8 : i32
    %82 = arith.index_cast %81 : i32 to index
    %c0_23 = arith.constant 0 : index
    %83 = vector.load %arg7[%82, %c0_23] : memref<64x128xf32, #tpu.memory_space<vmem>>, vector<8x128xf32>
    %84 = arith.truncf %79 : vector<8x32xf32> to vector<8x32xbf16>
    %cst_24 = arith.constant dense<0.000000e+00> : vector<8x128xf32>
    %85 = tpu.matmul %84, %13, %cst_24 {dimension_numbers = #tpu.dot_dimension_numbers<[1], [0], [0], [1], [0, 0, 1, 1], [], []>} : vector<8x32xbf16>, vector<32x128xbf16>, vector<8x128xf32> -> vector<8x128xf32>
    %86 = arith.addf %83, %85 : vector<8x128xf32>
    %87 = vector.extract_strided_slice %86 {offsets = [0, 0], sizes = [8, 32], strides = [1, 1]} : vector<8x128xf32> to vector<8x32xf32>
    %88 = arith.negf %87 : vector<8x32xf32>
    %89 = math.exp %88 : vector<8x32xf32>
    %cst_25 = arith.constant 1.000000e+00 : f32
    %90 = vector.broadcast %cst_25 : f32 to vector<8x32xf32>
    %91 = arith.addf %90, %89 : vector<8x32xf32>
    %92 = arith.divf %90, %91 : vector<8x32xf32>
    %93 = vector.extract_strided_slice %86 {offsets = [0, 32], sizes = [8, 32], strides = [1, 1]} : vector<8x128xf32> to vector<8x32xf32>
    %94 = arith.negf %93 : vector<8x32xf32>
    %95 = math.exp %94 : vector<8x32xf32>
    %cst_26 = arith.constant 1.000000e+00 : f32
    %96 = vector.broadcast %cst_26 : f32 to vector<8x32xf32>
    %97 = arith.addf %96, %95 : vector<8x32xf32>
    %98 = arith.divf %96, %97 : vector<8x32xf32>
    %99 = vector.extract_strided_slice %86 {offsets = [0, 64], sizes = [8, 32], strides = [1, 1]} : vector<8x128xf32> to vector<8x32xf32>
    %100 = math.tanh %99 : vector<8x32xf32>
    %101 = vector.extract_strided_slice %86 {offsets = [0, 96], sizes = [8, 32], strides = [1, 1]} : vector<8x128xf32> to vector<8x32xf32>
    %102 = arith.negf %101 : vector<8x32xf32>
    %103 = math.exp %102 : vector<8x32xf32>
    %cst_27 = arith.constant 1.000000e+00 : f32
    %104 = vector.broadcast %cst_27 : f32 to vector<8x32xf32>
    %105 = arith.addf %104, %103 : vector<8x32xf32>
    %106 = arith.divf %104, %105 : vector<8x32xf32>
    %107 = arith.mulf %98, %77 : vector<8x32xf32>
    %108 = arith.mulf %92, %100 : vector<8x32xf32>
    %109 = arith.addf %107, %108 : vector<8x32xf32>
    %110 = math.tanh %109 : vector<8x32xf32>
    %111 = arith.mulf %106, %110 : vector<8x32xf32>
    %c3_i32 = arith.constant 3 : i32
    %c8_i32_28 = arith.constant 8 : i32
    %112 = arith.muli %c3_i32, %c8_i32_28 : i32
    %113 = tpu.assume_multiple %112, 8 : i32
    %114 = arith.index_cast %113 : i32 to index
    %c0_29 = arith.constant 0 : index
    %115 = vector.load %arg7[%114, %c0_29] : memref<64x128xf32, #tpu.memory_space<vmem>>, vector<8x128xf32>
    %116 = arith.truncf %111 : vector<8x32xf32> to vector<8x32xbf16>
    %cst_30 = arith.constant dense<0.000000e+00> : vector<8x128xf32>
    %117 = tpu.matmul %116, %13, %cst_30 {dimension_numbers = #tpu.dot_dimension_numbers<[1], [0], [0], [1], [0, 0, 1, 1], [], []>} : vector<8x32xbf16>, vector<32x128xbf16>, vector<8x128xf32> -> vector<8x128xf32>
    %118 = arith.addf %115, %117 : vector<8x128xf32>
    %119 = vector.extract_strided_slice %118 {offsets = [0, 0], sizes = [8, 32], strides = [1, 1]} : vector<8x128xf32> to vector<8x32xf32>
    %120 = arith.negf %119 : vector<8x32xf32>
    %121 = math.exp %120 : vector<8x32xf32>
    %cst_31 = arith.constant 1.000000e+00 : f32
    %122 = vector.broadcast %cst_31 : f32 to vector<8x32xf32>
    %123 = arith.addf %122, %121 : vector<8x32xf32>
    %124 = arith.divf %122, %123 : vector<8x32xf32>
    %125 = vector.extract_strided_slice %118 {offsets = [0, 32], sizes = [8, 32], strides = [1, 1]} : vector<8x128xf32> to vector<8x32xf32>
    %126 = arith.negf %125 : vector<8x32xf32>
    %127 = math.exp %126 : vector<8x32xf32>
    %cst_32 = arith.constant 1.000000e+00 : f32
    %128 = vector.broadcast %cst_32 : f32 to vector<8x32xf32>
    %129 = arith.addf %128, %127 : vector<8x32xf32>
    %130 = arith.divf %128, %129 : vector<8x32xf32>
    %131 = vector.extract_strided_slice %118 {offsets = [0, 64], sizes = [8, 32], strides = [1, 1]} : vector<8x128xf32> to vector<8x32xf32>
    %132 = math.tanh %131 : vector<8x32xf32>
    %133 = vector.extract_strided_slice %118 {offsets = [0, 96], sizes = [8, 32], strides = [1, 1]} : vector<8x128xf32> to vector<8x32xf32>
    %134 = arith.negf %133 : vector<8x32xf32>
    %135 = math.exp %134 : vector<8x32xf32>
    %cst_33 = arith.constant 1.000000e+00 : f32
    %136 = vector.broadcast %cst_33 : f32 to vector<8x32xf32>
    %137 = arith.addf %136, %135 : vector<8x32xf32>
    %138 = arith.divf %136, %137 : vector<8x32xf32>
    %139 = arith.mulf %130, %109 : vector<8x32xf32>
    %140 = arith.mulf %124, %132 : vector<8x32xf32>
    %141 = arith.addf %139, %140 : vector<8x32xf32>
    %142 = math.tanh %141 : vector<8x32xf32>
    %143 = arith.mulf %138, %142 : vector<8x32xf32>
    %c4_i32 = arith.constant 4 : i32
    %c8_i32_34 = arith.constant 8 : i32
    %144 = arith.muli %c4_i32, %c8_i32_34 : i32
    %145 = tpu.assume_multiple %144, 8 : i32
    %146 = arith.index_cast %145 : i32 to index
    %c0_35 = arith.constant 0 : index
    %147 = vector.load %arg7[%146, %c0_35] : memref<64x128xf32, #tpu.memory_space<vmem>>, vector<8x128xf32>
    %148 = arith.truncf %143 : vector<8x32xf32> to vector<8x32xbf16>
    %cst_36 = arith.constant dense<0.000000e+00> : vector<8x128xf32>
    %149 = tpu.matmul %148, %13, %cst_36 {dimension_numbers = #tpu.dot_dimension_numbers<[1], [0], [0], [1], [0, 0, 1, 1], [], []>} : vector<8x32xbf16>, vector<32x128xbf16>, vector<8x128xf32> -> vector<8x128xf32>
    %150 = arith.addf %147, %149 : vector<8x128xf32>
    %151 = vector.extract_strided_slice %150 {offsets = [0, 0], sizes = [8, 32], strides = [1, 1]} : vector<8x128xf32> to vector<8x32xf32>
    %152 = arith.negf %151 : vector<8x32xf32>
    %153 = math.exp %152 : vector<8x32xf32>
    %cst_37 = arith.constant 1.000000e+00 : f32
    %154 = vector.broadcast %cst_37 : f32 to vector<8x32xf32>
    %155 = arith.addf %154, %153 : vector<8x32xf32>
    %156 = arith.divf %154, %155 : vector<8x32xf32>
    %157 = vector.extract_strided_slice %150 {offsets = [0, 32], sizes = [8, 32], strides = [1, 1]} : vector<8x128xf32> to vector<8x32xf32>
    %158 = arith.negf %157 : vector<8x32xf32>
    %159 = math.exp %158 : vector<8x32xf32>
    %cst_38 = arith.constant 1.000000e+00 : f32
    %160 = vector.broadcast %cst_38 : f32 to vector<8x32xf32>
    %161 = arith.addf %160, %159 : vector<8x32xf32>
    %162 = arith.divf %160, %161 : vector<8x32xf32>
    %163 = vector.extract_strided_slice %150 {offsets = [0, 64], sizes = [8, 32], strides = [1, 1]} : vector<8x128xf32> to vector<8x32xf32>
    %164 = math.tanh %163 : vector<8x32xf32>
    %165 = vector.extract_strided_slice %150 {offsets = [0, 96], sizes = [8, 32], strides = [1, 1]} : vector<8x128xf32> to vector<8x32xf32>
    %166 = arith.negf %165 : vector<8x32xf32>
    %167 = math.exp %166 : vector<8x32xf32>
    %cst_39 = arith.constant 1.000000e+00 : f32
    %168 = vector.broadcast %cst_39 : f32 to vector<8x32xf32>
    %169 = arith.addf %168, %167 : vector<8x32xf32>
    %170 = arith.divf %168, %169 : vector<8x32xf32>
    %171 = arith.mulf %162, %141 : vector<8x32xf32>
    %172 = arith.mulf %156, %164 : vector<8x32xf32>
    %173 = arith.addf %171, %172 : vector<8x32xf32>
    %174 = math.tanh %173 : vector<8x32xf32>
    %175 = arith.mulf %170, %174 : vector<8x32xf32>
    %c5_i32 = arith.constant 5 : i32
    %c8_i32_40 = arith.constant 8 : i32
    %176 = arith.muli %c5_i32, %c8_i32_40 : i32
    %177 = tpu.assume_multiple %176, 8 : i32
    %178 = arith.index_cast %177 : i32 to index
    %c0_41 = arith.constant 0 : index
    %179 = vector.load %arg7[%178, %c0_41] : memref<64x128xf32, #tpu.memory_space<vmem>>, vector<8x128xf32>
    %180 = arith.truncf %175 : vector<8x32xf32> to vector<8x32xbf16>
    %cst_42 = arith.constant dense<0.000000e+00> : vector<8x128xf32>
    %181 = tpu.matmul %180, %13, %cst_42 {dimension_numbers = #tpu.dot_dimension_numbers<[1], [0], [0], [1], [0, 0, 1, 1], [], []>} : vector<8x32xbf16>, vector<32x128xbf16>, vector<8x128xf32> -> vector<8x128xf32>
    %182 = arith.addf %179, %181 : vector<8x128xf32>
    %183 = vector.extract_strided_slice %182 {offsets = [0, 0], sizes = [8, 32], strides = [1, 1]} : vector<8x128xf32> to vector<8x32xf32>
    %184 = arith.negf %183 : vector<8x32xf32>
    %185 = math.exp %184 : vector<8x32xf32>
    %cst_43 = arith.constant 1.000000e+00 : f32
    %186 = vector.broadcast %cst_43 : f32 to vector<8x32xf32>
    %187 = arith.addf %186, %185 : vector<8x32xf32>
    %188 = arith.divf %186, %187 : vector<8x32xf32>
    %189 = vector.extract_strided_slice %182 {offsets = [0, 32], sizes = [8, 32], strides = [1, 1]} : vector<8x128xf32> to vector<8x32xf32>
    %190 = arith.negf %189 : vector<8x32xf32>
    %191 = math.exp %190 : vector<8x32xf32>
    %cst_44 = arith.constant 1.000000e+00 : f32
    %192 = vector.broadcast %cst_44 : f32 to vector<8x32xf32>
    %193 = arith.addf %192, %191 : vector<8x32xf32>
    %194 = arith.divf %192, %193 : vector<8x32xf32>
    %195 = vector.extract_strided_slice %182 {offsets = [0, 64], sizes = [8, 32], strides = [1, 1]} : vector<8x128xf32> to vector<8x32xf32>
    %196 = math.tanh %195 : vector<8x32xf32>
    %197 = vector.extract_strided_slice %182 {offsets = [0, 96], sizes = [8, 32], strides = [1, 1]} : vector<8x128xf32> to vector<8x32xf32>
    %198 = arith.negf %197 : vector<8x32xf32>
    %199 = math.exp %198 : vector<8x32xf32>
    %cst_45 = arith.constant 1.000000e+00 : f32
    %200 = vector.broadcast %cst_45 : f32 to vector<8x32xf32>
    %201 = arith.addf %200, %199 : vector<8x32xf32>
    %202 = arith.divf %200, %201 : vector<8x32xf32>
    %203 = arith.mulf %194, %173 : vector<8x32xf32>
    %204 = arith.mulf %188, %196 : vector<8x32xf32>
    %205 = arith.addf %203, %204 : vector<8x32xf32>
    %206 = math.tanh %205 : vector<8x32xf32>
    %207 = arith.mulf %202, %206 : vector<8x32xf32>
    %c6_i32 = arith.constant 6 : i32
    %c8_i32_46 = arith.constant 8 : i32
    %208 = arith.muli %c6_i32, %c8_i32_46 : i32
    %209 = tpu.assume_multiple %208, 8 : i32
    %210 = arith.index_cast %209 : i32 to index
    %c0_47 = arith.constant 0 : index
    %211 = vector.load %arg7[%210, %c0_47] : memref<64x128xf32, #tpu.memory_space<vmem>>, vector<8x128xf32>
    %212 = arith.truncf %207 : vector<8x32xf32> to vector<8x32xbf16>
    %cst_48 = arith.constant dense<0.000000e+00> : vector<8x128xf32>
    %213 = tpu.matmul %212, %13, %cst_48 {dimension_numbers = #tpu.dot_dimension_numbers<[1], [0], [0], [1], [0, 0, 1, 1], [], []>} : vector<8x32xbf16>, vector<32x128xbf16>, vector<8x128xf32> -> vector<8x128xf32>
    %214 = arith.addf %211, %213 : vector<8x128xf32>
    %215 = vector.extract_strided_slice %214 {offsets = [0, 0], sizes = [8, 32], strides = [1, 1]} : vector<8x128xf32> to vector<8x32xf32>
    %216 = arith.negf %215 : vector<8x32xf32>
    %217 = math.exp %216 : vector<8x32xf32>
    %cst_49 = arith.constant 1.000000e+00 : f32
    %218 = vector.broadcast %cst_49 : f32 to vector<8x32xf32>
    %219 = arith.addf %218, %217 : vector<8x32xf32>
    %220 = arith.divf %218, %219 : vector<8x32xf32>
    %221 = vector.extract_strided_slice %214 {offsets = [0, 32], sizes = [8, 32], strides = [1, 1]} : vector<8x128xf32> to vector<8x32xf32>
    %222 = arith.negf %221 : vector<8x32xf32>
    %223 = math.exp %222 : vector<8x32xf32>
    %cst_50 = arith.constant 1.000000e+00 : f32
    %224 = vector.broadcast %cst_50 : f32 to vector<8x32xf32>
    %225 = arith.addf %224, %223 : vector<8x32xf32>
    %226 = arith.divf %224, %225 : vector<8x32xf32>
    %227 = vector.extract_strided_slice %214 {offsets = [0, 64], sizes = [8, 32], strides = [1, 1]} : vector<8x128xf32> to vector<8x32xf32>
    %228 = math.tanh %227 : vector<8x32xf32>
    %229 = vector.extract_strided_slice %214 {offsets = [0, 96], sizes = [8, 32], strides = [1, 1]} : vector<8x128xf32> to vector<8x32xf32>
    %230 = arith.negf %229 : vector<8x32xf32>
    %231 = math.exp %230 : vector<8x32xf32>
    %cst_51 = arith.constant 1.000000e+00 : f32
    %232 = vector.broadcast %cst_51 : f32 to vector<8x32xf32>
    %233 = arith.addf %232, %231 : vector<8x32xf32>
    %234 = arith.divf %232, %233 : vector<8x32xf32>
    %235 = arith.mulf %226, %205 : vector<8x32xf32>
    %236 = arith.mulf %220, %228 : vector<8x32xf32>
    %237 = arith.addf %235, %236 : vector<8x32xf32>
    %238 = math.tanh %237 : vector<8x32xf32>
    %239 = arith.mulf %234, %238 : vector<8x32xf32>
    %c7_i32 = arith.constant 7 : i32
    %c8_i32_52 = arith.constant 8 : i32
    %240 = arith.muli %c7_i32, %c8_i32_52 : i32
    %241 = tpu.assume_multiple %240, 8 : i32
    %242 = arith.index_cast %241 : i32 to index
    %c0_53 = arith.constant 0 : index
    %243 = vector.load %arg7[%242, %c0_53] : memref<64x128xf32, #tpu.memory_space<vmem>>, vector<8x128xf32>
    %244 = arith.truncf %239 : vector<8x32xf32> to vector<8x32xbf16>
    %cst_54 = arith.constant dense<0.000000e+00> : vector<8x128xf32>
    %245 = tpu.matmul %244, %13, %cst_54 {dimension_numbers = #tpu.dot_dimension_numbers<[1], [0], [0], [1], [0, 0, 1, 1], [], []>} : vector<8x32xbf16>, vector<32x128xbf16>, vector<8x128xf32> -> vector<8x128xf32>
    %246 = arith.addf %243, %245 : vector<8x128xf32>
    %247 = vector.extract_strided_slice %246 {offsets = [0, 0], sizes = [8, 32], strides = [1, 1]} : vector<8x128xf32> to vector<8x32xf32>
    %248 = arith.negf %247 : vector<8x32xf32>
    %249 = math.exp %248 : vector<8x32xf32>
    %cst_55 = arith.constant 1.000000e+00 : f32
    %250 = vector.broadcast %cst_55 : f32 to vector<8x32xf32>
    %251 = arith.addf %250, %249 : vector<8x32xf32>
    %252 = arith.divf %250, %251 : vector<8x32xf32>
    %253 = vector.extract_strided_slice %246 {offsets = [0, 32], sizes = [8, 32], strides = [1, 1]} : vector<8x128xf32> to vector<8x32xf32>
    %254 = arith.negf %253 : vector<8x32xf32>
    %255 = math.exp %254 : vector<8x32xf32>
    %cst_56 = arith.constant 1.000000e+00 : f32
    %256 = vector.broadcast %cst_56 : f32 to vector<8x32xf32>
    %257 = arith.addf %256, %255 : vector<8x32xf32>
    %258 = arith.divf %256, %257 : vector<8x32xf32>
    %259 = vector.extract_strided_slice %246 {offsets = [0, 64], sizes = [8, 32], strides = [1, 1]} : vector<8x128xf32> to vector<8x32xf32>
    %260 = math.tanh %259 : vector<8x32xf32>
    %261 = vector.extract_strided_slice %246 {offsets = [0, 96], sizes = [8, 32], strides = [1, 1]} : vector<8x128xf32> to vector<8x32xf32>
    %262 = arith.negf %261 : vector<8x32xf32>
    %263 = math.exp %262 : vector<8x32xf32>
    %cst_57 = arith.constant 1.000000e+00 : f32
    %264 = vector.broadcast %cst_57 : f32 to vector<8x32xf32>
    %265 = arith.addf %264, %263 : vector<8x32xf32>
    %266 = arith.divf %264, %265 : vector<8x32xf32>
    %267 = arith.mulf %258, %237 : vector<8x32xf32>
    %268 = arith.mulf %252, %260 : vector<8x32xf32>
    %269 = arith.addf %267, %268 : vector<8x32xf32>
    %270 = math.tanh %269 : vector<8x32xf32>
    %271 = arith.mulf %266, %270 : vector<8x32xf32>
    %c8_i32_58 = arith.constant 8 : i32
    %c0_59 = arith.constant 0 : index
    %c0_60 = arith.constant 0 : index
    %272 = vector.load %arg4[%c0_59, %c0_60] : memref<1x32xf32, #tpu.memory_space<vmem>>, vector<1x32xf32>
    %273 = vector.broadcast %272 : vector<1x32xf32> to vector<8x32xf32>
    %274 = arith.mulf %271, %273 : vector<8x32xf32>
    %cst_61 = arith.constant dense<0.000000e+00> : vector<8xf32>
    %275 = vector.multi_reduction <add>, %274, %cst_61 [1] : vector<8x32xf32> to vector<8xf32>
    %276 = vector.shape_cast %275 : vector<8xf32> to vector<8x1xf32>
    %c0_62 = arith.constant 0 : index
    %c0_63 = arith.constant 0 : index
    %277 = vector.load %arg5[%c0_62, %c0_63] : memref<1x1xf32, #tpu.memory_space<vmem>>, vector<1x1xf32>
    %278 = vector.broadcast %277 : vector<1x1xf32> to vector<8x1xf32>
    %279 = arith.addf %276, %278 : vector<8x1xf32>
    %280 = arith.negf %279 : vector<8x1xf32>
    %281 = math.exp %280 : vector<8x1xf32>
    %cst_64 = arith.constant 1.000000e+00 : f32
    %282 = vector.broadcast %cst_64 : f32 to vector<8x1xf32>
    %283 = arith.addf %282, %281 : vector<8x1xf32>
    %284 = arith.divf %282, %283 : vector<8x1xf32>
    %285 = vector.shape_cast %284 : vector<8x1xf32> to vector<8x1xf32>
    %286 = vector.broadcast %285 : vector<8x1xf32> to vector<8x128xf32>
    %c0_65 = arith.constant 0 : index
    %c0_66 = arith.constant 0 : index
    %287 = vector.load %arg6[%c0_65, %c0_66] : memref<8x128xf32, #tpu.memory_space<vmem>>, vector<8x128xf32>
    tpu.vector_store %arg6[%c0_65, %c0_66], %286 {strides = array<i32>} : memref<8x128xf32, #tpu.memory_space<vmem>>, vector<8x128xf32>,
    return
  }
}

</mosaic_0001>

<bundles_post_ra>
// kernel: tpu_custom_call.1
= control target key start
LH: loop header
LB: loop body
LE: loop exit
PB: predicated region body
PF: predicated region fallthrough
CT: control target
= control target key end

     0   :  { %s1466_s0 = inlined_call_operand.vmem [shape: s32[64,1], index: 0, kind: input, shape index: {}]   ;;  %s1467_s1 = inlined_call_operand.vmem [shape: bf16[128,128], index: 1, kind: input, shape index: {}]   ;;  %s1468_s2 = inlined_call_operand.hbm [shape: bf16[32,128], index: 2, kind: input, shape index: {}]   ;;  %s1469_s3 = inlined_call_operand.vmem [shape: f32[1,128], index: 3, kind: input, shape index: {}]   ;;  %s1470_s4 = inlined_call_operand.vmem [shape: f32[1,32], index: 4, kind: input, shape index: {}]   ;;  %s1471_s5 = inlined_call_operand.<no memory space> [shape: f32[1,1], index: 5, kind: input, shape index: {}]   ;;  %s1472_s6 = inlined_call_operand.hbm [shape: f32[8,128], index: 6, kind: output, shape index: {}]  }
   0x1   :  { %v11_v0 = vstv %s1471_s5 }
   0x2   :  { %12 = vst [vmem:[#allocation3] sm:$0x1] %v11_v0 }
   0x3   :  { %13 = vsyncpa [#allocation5], 0 }
   0x4   :  { %14 = vsyncpa [#allocation6], 0  ;;  %s1210_s23 = smov [#allocation4]   ;;  %s1162_s27 = scalar_lea.hbm %s1468_s2, 256 }
   0x5   :  { %s24_s24 = sshll.u32 %s1210_s23, 4  ;;  %p1163_p0 = scmp.ne.s32.totalorder %s1468_s2, %s1162_s27  ;;  %s25_s24 = int_to_ptr.vmem [resolvable:$true] %s24_s24 }
   0x6   :  { %p1166_p1 = scmp.lt.u32.totalorder %s1162_s27, %s1468_s2 }
   0x8   :  { %p1168_p2 = pnand %p1166_p1, %p1163_p0 }
   0xa   :  { %1171 = shalt.err (!%p1168_p2)
}
   0xb   :  { %s1172_s5 = scalar_lea.vmem %s25_s24, 256  ;;  %p1177_p4 = scmp.lt.s32.totalorder %s25_s24, %s25_s24 }
   0xc   :  { %p1173_p3 = scmp.ne.s32.totalorder %s25_s24, %s1172_s5  ;;  %p1178_p5 = scmp.lt.s32.totalorder %s1172_s5, %s1172_s5 }
   0xe   :  { %p1179_p6 = por %p1178_p5, %p1177_p4 }
  0x10   :  { %p1180_p7 = pnand %p1179_p6, %p1173_p3 }
  0x12   :  { %1183 = shalt.err (!%p1180_p7)
}
  0x13   :  { %s1211_s8 = smov 64   ;;  %s1212_s9 = smov 4  }
  0x14   :  { %30 = dma.hbm_to_vmem [thread:$0]  %s1468_s2, 256, %s25_s24, [#allocation5], %s1211_s8, %s1211_s8, %s1212_s9  }
  0x15   :  { %1206 = dma.done.wait [#allocation5], 256  }
  0x16   :  { %1207 = vsyncadd [#allocation5], 4294967040  ;;  %v1213_v1 = vmov 0   ;;  %v1214_v2 = vmov 0.0   ;;  %v43_v3 = vld [vmem:[%s1466_s0 + $0x10] sm:$0xff]  ;;  %v41_v4 = vld [vmem:[%s1466_s0] sm:$0xff]  ;;  %v49_v17 = vlaneseq }
  0x17   :  { %1083 = vset.pattern.permute.xlu1 %v1213_v1  ;;  %1082 = vset.pattern.permute.xlu0 %v1213_v1  ;;  %v44_v5 = vld [vmem:[%s1466_s0 + $0x18] sm:$0xff]  ;;  %v42_v6 = vld [vmem:[%s1466_s0 + $0x8] sm:$0xff]  ;;  %v1084_v7 = vld [vmem:[%s1467_s1] sm:$0xff]   ;;  %vm1215_vm0 = vmmov 0   ;;  %v1216_v23 = vmov 1.0|1.0  }
  0x18   :  { %1008 = vmatprep.subr.bf16.mxu1 %v1214_v2  ;;  %58 = vperm.xlu1 %1083, %v43_v3   ;;  %v1085_v8 = vld [vmem:[%s1467_s1 + $0x8] sm:$0xff]   ;;  %v1086_v9 = vld [vmem:[%s1467_s1 + $0x10] sm:$0xff]   ;;  %v1087_v11 = vld [vmem:[%s1467_s1 + $0x18] sm:$0xff]   ;;  %v1326_v20 = vand.u32 127, %v49_v17  ;;  %vm264_vm7 = vcmask 261120   ;;  %s1218_s20 = smov 96  }
  0x19   :  { %52 = vperm.xlu0 %1082, %v41_v4   ;;  %984 = vmatprep.subr.bf16.mxu0 %v1084_v7  ;;  %v1296_v10 = vld [vmem:[#allocation4] sm:$0xff]   ;;  %v1302_v12 = vld [vmem:[#allocation4 + $0x8] sm:$0xff]   ;;  %v1092_v16 = vld [vmem:[%s1467_s1 + $0x38] sm:$0xff]  }
  0x1a   :  { %985 = vmatpush3.bf16.msra.mxu0 %v1084_v7  ;;  %1012 = vmatprep.mubr.msk.bf16.mxu1 %vm1215_vm0, %v1214_v2  ;;  %v1088_v13 = vld [vmem:[%s1467_s1 + $0x20] sm:$0xff]   ;;  %v1089_v14 = vld [vmem:[%s1467_s1 + $0x28] sm:$0xff]   ;;  %v1090_v15 = vld [vmem:[%s1467_s1 + $0x30] sm:$0xff]  }
  0x1b   :  { %986 = vmatprep.subr.bf16.mxu0 %v1085_v8  ;;  %1009 = vmatpush3.bf16.msra.mxu1 %v1296_v10  ;;  %v1341_v28 = vld [vmem:[%s1469_s3] ss:$0 sm:$0xff]  ;;  %s1217_s3 = smov 32  }
  0x1c   :  { %61 = vperm.xlu1 %1083, %v44_v5   ;;  %1010 = vmatprep.subr.bf16.mxu1 %v1214_v2 }
  0x1d   :  { %55 = vperm.xlu0 %1082, %v42_v6  }
  0x1e   :  { %987 = vmatpush3.bf16.msra.mxu0 %v1085_v8 }
  0x1f   :  { %988 = vmatprep.subr.bf16.mxu0 %v1086_v9  ;;  %1011 = vmatpush3.bf16.msra.mxu1 %v1302_v12 }
  0x20   :  { %1016 = vmatprep.subr.bf16.mxu1 %v1214_v2 }
  0x22   :  { %989 = vmatpush3.bf16.msra.mxu0 %v1086_v9  ;;  %1013 = vmatmul.mubr.bf16.vlgmr.msra.gmra.mrb[0].mxu1 %v1213_v1 }
  0x23   :  { %990 = vmatprep.subr.bf16.mxu0 %v1087_v11  ;;  %1017 = vmatpush3.bf16.msra.mxu1 %v1296_v10 }
  0x24   :  { %1018 = vmatprep.subr.bf16.mxu1 %v1214_v2  ;;  %1020 = vmatprep.mubr.msk.bf16.mxu1 %vm1215_vm0, %v1214_v2 }
  0x26   :  { %991 = vmatpush3.bf16.msra.mxu0 %v1087_v11 }
  0x27   :  { %992 = vmatprep.subr.bf16.mxu0 %v1088_v13  ;;  %1019 = vmatpush3.bf16.msra.mxu1 %v1302_v12 }
  0x28   :  { %1024 = vmatprep.subr.bf16.mxu1 %v1214_v2 }
  0x2a   :  { %993 = vmatpush3.bf16.msra.mxu0 %v1088_v13 }
  0x2b   :  { %994 = vmatprep.subr.bf16.mxu0 %v1089_v14 }
  0x2e   :  { %995 = vmatpush3.bf16.msra.mxu0 %v1089_v14 }
  0x2f   :  { %996 = vmatprep.subr.bf16.mxu0 %v1090_v15 }
  0x32   :  { %997 = vmatpush3.bf16.msra.mxu0 %v1090_v15 }
  0x33   :  { %998 = vmatprep.subr.bf16.mxu0 %v1092_v16 }
  0x36   :  { %999 = vmatpush3.bf16.msra.mxu0 %v1092_v16 }
  0x37   :  { %1048 = vmatprep.subr.bf16.mxu0 %v1214_v2 }
  0x97   :  { %v59_v18 = vpop.permute.xlu1 %58 }
  0x98   :  { %v53_v19 = vpop.permute.xlu0 %52  ;;  %vm77_vm1 = vcmp.eq.s32.totalorder %v1326_v20, %v59_v18 }
  0x99   :  { %vm75_vm4 = vcmp.eq.s32.totalorder %v1326_v20, %v53_v19 }
  0x9b   :  { %v62_v21 = vpop.permute.xlu1 %61 }
  0x9c   :  { %v56_v22 = vpop.permute.xlu0 %55  ;;  %vm78_vm2 = vcmp.eq.s32.totalorder %v1326_v20, %v62_v21 }
  0x9d   :  { %vm76_vm3 = vcmp.eq.s32.totalorder %v1326_v20, %v56_v22  ;;  %vm922_vm5 = vmpackc.low %vm78_vm2, %vm77_vm1 }
  0x9e   :  { %vm920_vm6 = vmpackc.low %vm76_vm3, %vm75_vm4 }
  0x9f   :  { %1000 = vmatprep.mubr.msk.bf16.mxu0 %vm920_vm6, %v1216_v23 }
  0xa0   :  { %1001 = vmatmul.mubr.msk.bf16.vlgmr.msra.gmra.mrb[0].mxu0 %vm922_vm5, %v1216_v23 }
  0xa1   :  { %1049 = vmatpush3.bf16.msra.mxu0 %v1296_v10 }
  0xa2   :  { %1050 = vmatprep.subr.bf16.mxu0 %v1214_v2 }
  0xa5   :  { %1051 = vmatpush3.bf16.msra.mxu0 %v1302_v12 }
  0xa6   :  { %1064 = vmatprep.subr.bf16.mxu0 %v1214_v2 }
  0xf5   :  { %v302_v24 = vpop.f32.mrb[0].mxu1 }
  0xf6   :  { %v1014_v25 = vpop.f32.mrb[1].mxu1 }
  0xf7   :  { %v305_v26 = vpop.f32.mrb[2].mxu1 }
  0xf8   :  { %v1015_v27 = vpop.f32.mrb[3].mxu1 }
 0x173   :  { %v1343_v29 = vpop.f32.mrb[0].mxu0 }
 0x174   :  { %v208_v30 = vpop.f32.mrb[1].mxu0  ;;  %v217_v8 = vadd.f32 %v1343_v29, %v1341_v28 }
 0x175   :  { %v209_v31 = vadd.f32 %v1341_v28, %v208_v30  ;;  %v1346_v32 = vpop.f32.mrb[2].mxu0 }
 0x176   :  { %v211_v33 = vpop.f32.mrb[3].mxu0 }
 0x177   :  { %v308_v34 = vadd.f32 %v302_v24, %v209_v31  ;;  %v212_v50 = vadd.f32 %v1341_v28, %v211_v33 }
 0x179   :  { %1094 = vtanh.f32 %v308_v34  ;;  %v930_v36 = vmul.f32 -1.442695, %v308_v34 }
 0x17b   :  { %1096 = vpow2.f32 %v930_v36 }
 0x183   :  { %v1095_v35 = vpop.eup %1094 }
 0x184   :  { %318 = vrot.lane.b32.xlu0 %v1095_v35, %s1211_s8  ;;  %v220_v35 = vadd.f32 %v1346_v32, %v1341_v28  ;;  %v45_v32 = vld [vmem:[%s1466_s0 + $0x20] sm:$0xff] }
 0x185   :  { %v1097_v37 = vpop.eup %1096 }
 0x186   :  { %v312_v38 = vadd.f32 1.0, %v1097_v37 }
 0x188   :  { %1098 = vrcp.f32 %v312_v38 }
 0x192   :  { %v1099_v39 = vpop.eup %1098 }
 0x193   :  { %v316_v42 = vmul.f32 0.0, %v1099_v39 }
 0x1f6   :  { %v319_v40 = vpop.permute.xlu0 %318 }
 0x1f7   :  { %v321_v41 = vmul.f32 %v1099_v39, %v319_v40 }
 0x1f9   :  { %323 = vrot.lane.b32.xlu1 %v321_v41, %s1217_s3 }
 0x26b   :  { %v324_v43 = vpop.permute.xlu1 %323 }
 0x26c   :  { %v326_v44 = vadd.f32 %v324_v43, %v316_v42 }
 0x26e   :  { %1100 = vtanh.f32 %v326_v44 }
 0x278   :  { %v1101_v45 = vpop.eup %1100 }
 0x279   :  { %329 = vrot.lane.b32.xlu0 %v1101_v45, %s1211_s8 }
 0x2eb   :  { %v330_v46 = vpop.permute.xlu0 %329 }
 0x2ec   :  { %v332_v47 = vmul.f32 %v1099_v39, %v330_v46 }
 0x2ee   :  { %v335_v48 = vpack.c.bf16 %v332_v47, %v332_v47 }
 0x2f0   :  { %337 = vrot.lane.b32.xlu1 %v335_v48, %s1217_s3  ;;  %v47_v48 = vld [vmem:[%s1466_s0 + $0x30] sm:$0xff] }
 0x362   :  { %v338_v49 = vpop.permute.xlu1 %337 }
 0x363   :  { %1021 = vmatmul.mubr.msk.bf16.vlgmr.msra.gmra.mrb[4].mxu1 %vm264_vm7, %v338_v49 }
 0x364   :  { %1025 = vmatpush3.bf16.msra.mxu1 %v1296_v10  ;;  %1028 = vmatprep.mubr.msk.bf16.mxu1 %vm1215_vm0, %v1214_v2 }
 0x365   :  { %1026 = vmatprep.subr.bf16.mxu1 %v1214_v2 }
 0x368   :  { %1027 = vmatpush3.bf16.msra.mxu1 %v1302_v12 }
 0x369   :  { %1032 = vmatprep.subr.bf16.mxu1 %v1214_v2 }
 0x436   :  { %v376_v51 = vpop.f32.mrb[4].mxu1 }
 0x437   :  { %v382_v52 = vadd.f32 %v376_v51, %v212_v50  ;;  %v1022_v53 = vpop.f32.mrb[5].mxu1 }
 0x438   :  { %v379_v54 = vpop.f32.mrb[6].mxu1  ;;  %v46_v53 = vld [vmem:[%s1466_s0 + $0x28] sm:$0xff] }
 0x439   :  { %1102 = vtanh.f32 %v382_v52  ;;  %v1023_v55 = vpop.f32.mrb[7].mxu1  ;;  %v932_v57 = vmul.f32 -1.442695, %v382_v52  ;;  %v48_v54 = vld [vmem:[%s1466_s0 + $0x38] sm:$0xff] }
 0x43b   :  { %1104 = vpow2.f32 %v932_v57 }
 0x443   :  { %v1103_v56 = vpop.eup %1102 }
 0x444   :  { %392 = vrot.lane.b32.xlu0 %v1103_v56, %s1211_s8 }
 0x445   :  { %v1105_v58 = vpop.eup %1104 }
 0x446   :  { %v386_v59 = vadd.f32 1.0, %v1105_v58 }
 0x448   :  { %1106 = vrcp.f32 %v386_v59 }
 0x452   :  { %v1107_v60 = vpop.eup %1106 }
 0x453   :  { %v390_v63 = vmul.f32 %v1107_v60, %v326_v44 }
 0x4b6   :  { %v393_v61 = vpop.permute.xlu0 %392 }
 0x4b7   :  { %v395_v62 = vmul.f32 %v1107_v60, %v393_v61 }
 0x4b9   :  { %397 = vrot.lane.b32.xlu1 %v395_v62, %s1217_s3 }
 0x52b   :  { %v398_v0 = vpop.permute.xlu1 %397 }
 0x52c   :  { %v400_v1 = vadd.f32 %v398_v0, %v390_v63 }
 0x52e   :  { %1108 = vtanh.f32 %v400_v1 }
 0x538   :  { %v1109_v3 = vpop.eup %1108 }
 0x539   :  { %403 = vrot.lane.b32.xlu0 %v1109_v3, %s1211_s8 }
 0x5ab   :  { %v404_v4 = vpop.permute.xlu0 %403 }
 0x5ac   :  { %v406_v5 = vmul.f32 %v1107_v60, %v404_v4 }
 0x5ae   :  { %v409_v6 = vpack.c.bf16 %v406_v5, %v406_v5 }
 0x5b0   :  { %411 = vrot.lane.b32.xlu1 %v409_v6, %s1217_s3 }
 0x622   :  { %v412_v7 = vpop.permute.xlu1 %411 }
 0x623   :  { %1029 = vmatmul.mubr.msk.bf16.vlgmr.msra.gmra.mrb[8].mxu1 %vm264_vm7, %v412_v7 }
 0x624   :  { %1033 = vmatpush3.bf16.msra.mxu1 %v1296_v10  ;;  %1036 = vmatprep.mubr.msk.bf16.mxu1 %vm1215_vm0, %v1214_v2 }
 0x625   :  { %1034 = vmatprep.subr.bf16.mxu1 %v1214_v2 }
 0x628   :  { %1035 = vmatpush3.bf16.msra.mxu1 %v1302_v12 }
 0x629   :  { %1040 = vmatprep.subr.bf16.mxu1 %v1214_v2 }
 0x6f6   :  { %v450_v9 = vpop.f32.mrb[8].mxu1 }
 0x6f7   :  { %v456_v11 = vadd.f32 %v450_v9, %v217_v8  ;;  %v1030_v13 = vpop.f32.mrb[9].mxu1 }
 0x6f8   :  { %v453_v14 = vpop.f32.mrb[10].mxu1 }
 0x6f9   :  { %1110 = vtanh.f32 %v456_v11  ;;  %v1031_v15 = vpop.f32.mrb[11].mxu1  ;;  %v934_v17 = vmul.f32 -1.442695, %v456_v11 }
 0x6fb   :  { %1112 = vpow2.f32 %v934_v17 }
 0x703   :  { %v1111_v16 = vpop.eup %1110 }
 0x704   :  { %466 = vrot.lane.b32.xlu0 %v1111_v16, %s1211_s8 }
 0x705   :  { %v1113_v18 = vpop.eup %1112 }
 0x706   :  { %v460_v19 = vadd.f32 1.0, %v1113_v18 }
 0x708   :  { %1114 = vrcp.f32 %v460_v19 }
 0x712   :  { %v1115_v21 = vpop.eup %1114 }
 0x713   :  { %v464_v25 = vmul.f32 %v1115_v21, %v400_v1 }
 0x776   :  { %v467_v22 = vpop.permute.xlu0 %466 }
 0x777   :  { %v469_v24 = vmul.f32 %v1115_v21, %v467_v22 }
 0x779   :  { %471 = vrot.lane.b32.xlu1 %v469_v24, %s1217_s3 }
 0x7eb   :  { %v472_v26 = vpop.permute.xlu1 %471 }
 0x7ec   :  { %v474_v27 = vadd.f32 %v472_v26, %v464_v25 }
 0x7ee   :  { %1116 = vtanh.f32 %v474_v27 }
 0x7f8   :  { %v1117_v29 = vpop.eup %1116 }
 0x7f9   :  { %477 = vrot.lane.b32.xlu0 %v1117_v29, %s1211_s8 }
 0x86b   :  { %v478_v30 = vpop.permute.xlu0 %477 }
 0x86c   :  { %v480_v31 = vmul.f32 %v1115_v21, %v478_v30 }
 0x86e   :  { %v483_v33 = vpack.c.bf16 %v480_v31, %v480_v31 }
 0x870   :  { %485 = vrot.lane.b32.xlu1 %v483_v33, %s1217_s3 }
 0x8e2   :  { %v486_v34 = vpop.permute.xlu1 %485 }
 0x8e3   :  { %1037 = vmatmul.mubr.msk.bf16.vlgmr.msra.gmra.mrb[12].mxu1 %vm264_vm7, %v486_v34 }
 0x8e4   :  { %1041 = vmatpush3.bf16.msra.mxu1 %v1296_v10  ;;  %1044 = vmatprep.mubr.msk.bf16.mxu1 %vm1215_vm0, %v1214_v2 }
 0x8e5   :  { %1042 = vmatprep.subr.bf16.mxu1 %v1214_v2 }
 0x8e8   :  { %1043 = vmatpush3.bf16.msra.mxu1 %v1302_v12 }
 0x8e9   :  { %1056 = vmatprep.subr.bf16.mxu1 %v1214_v2 }
 0x9b6   :  { %v524_v36 = vpop.f32.mrb[12].mxu1 }
 0x9b7   :  { %v530_v37 = vadd.f32 %v524_v36, %v220_v35  ;;  %v1038_v38 = vpop.f32.mrb[13].mxu1 }
 0x9b8   :  { %v527_v39 = vpop.f32.mrb[14].mxu1 }
 0x9b9   :  { %1118 = vtanh.f32 %v530_v37  ;;  %v1039_v40 = vpop.f32.mrb[15].mxu1  ;;  %v936_v42 = vmul.f32 -1.442695, %v530_v37 }
 0x9bb   :  { %1120 = vpow2.f32 %v936_v42 }
 0x9c3   :  { %v1119_v41 = vpop.eup %1118 }
 0x9c4   :  { %540 = vrot.lane.b32.xlu0 %v1119_v41, %s1211_s8 }
 0x9c5   :  { %v1121_v43 = vpop.eup %1120 }
 0x9c6   :  { %v534_v44 = vadd.f32 1.0, %v1121_v43 }
 0x9c8   :  { %1122 = vrcp.f32 %v534_v44 }
 0x9d2   :  { %v1123_v45 = vpop.eup %1122 }
 0x9d3   :  { %v538_v49 = vmul.f32 %v1123_v45, %v474_v27 }
 0xa36   :  { %v541_v46 = vpop.permute.xlu0 %540 }
 0xa37   :  { %v543_v47 = vmul.f32 %v1123_v45, %v541_v46 }
 0xa39   :  { %545 = vrot.lane.b32.xlu1 %v543_v47, %s1217_s3 }
 0xa3d   :  { %64 = vperm.xlu1 %1083, %v45_v32  }
 0xa41   :  { %70 = vperm.xlu1 %1083, %v47_v48  }
 0xaab   :  { %v546_v50 = vpop.permute.xlu1 %545 }
 0xaac   :  { %v548_v51 = vadd.f32 %v546_v50, %v538_v49 }
 0xaae   :  { %1124 = vtanh.f32 %v548_v51 }
 0xab8   :  { %v1125_v52 = vpop.eup %1124 }
 0xab9   :  { %551 = vrot.lane.b32.xlu0 %v1125_v52, %s1211_s8 }
 0xabc   :  { %v65_v58 = vpop.permute.xlu1 %64 }
 0xabd   :  { %67 = vperm.xlu0 %1082, %v46_v53   ;;  %vm79_vm8 = vcmp.eq.s32.totalorder %v1326_v20, %v65_v58 }
 0xac0   :  { %v71_v60 = vpop.permute.xlu1 %70 }
 0xac1   :  { %73 = vperm.xlu0 %1082, %v48_v54   ;;  %vm81_vm11 = vcmp.eq.s32.totalorder %v1326_v20, %v71_v60 }
 0xb2b   :  { %v552_v55 = vpop.permute.xlu0 %551 }
 0xb2c   :  { %v554_v56 = vmul.f32 %v1123_v45, %v552_v55 }
 0xb2e   :  { %v557_v57 = vpack.c.bf16 %v554_v56, %v554_v56 }
 0xb30   :  { %559 = vrot.lane.b32.xlu1 %v557_v57, %s1217_s3 }
 0xb3c   :  { %v68_v59 = vpop.permute.xlu0 %67 }
 0xb3d   :  { %vm80_vm9 = vcmp.eq.s32.totalorder %v1326_v20, %v68_v59 }
 0xb3e   :  { %vm924_vm10 = vmpackc.low %vm80_vm9, %vm79_vm8 }
 0xb3f   :  { %1004 = vmatprep.mubr.msk.bf16.mxu0 %vm924_vm10, %v1216_v23 }
 0xb40   :  { %v74_v61 = vpop.permute.xlu0 %73 }
 0xb41   :  { %vm82_vm12 = vcmp.eq.s32.totalorder %v1326_v20, %v74_v61 }
 0xb42   :  { %vm926_vm13 = vmpackc.low %vm82_vm12, %vm81_vm11 }
 0xb43   :  { %1005 = vmatmul.mubr.msk.bf16.gmra.mrb[4].mxu0 %vm926_vm13, %v1216_v23 }
 0xb44   :  { %1052 = vmatprep.mubr.msk.bf16.mxu0 %vm1215_vm0, %v1214_v2 }
 0xba2   :  { %v560_v62 = vpop.permute.xlu1 %559 }
 0xba3   :  { %1045 = vmatmul.mubr.msk.bf16.vlgmr.msra.gmra.mrb[16].mxu1 %vm264_vm7, %v560_v62 }
 0xba4   :  { %1057 = vmatpush3.bf16.msra.mxu1 %v1296_v10  ;;  %1060 = vmatprep.mubr.msk.bf16.mxu1 %vm1215_vm0, %v1214_v2 }
 0xba5   :  { %1058 = vmatprep.subr.bf16.mxu1 %v1214_v2 }
 0xba8   :  { %1059 = vmatpush3.bf16.msra.mxu1 %v1302_v12 }
 0xc16   :  { %v1416_v63 = vpop.f32.mrb[4].mxu0 }
 0xc17   :  { %v224_v20 = vpop.f32.mrb[5].mxu0  ;;  %v233_v47 = vadd.f32 %v1416_v63, %v1341_v28 }
 0xc18   :  { %v1418_v0 = vpop.f32.mrb[6].mxu0  ;;  %v225_v1 = vadd.f32 %v1341_v28, %v224_v20 }
 0xc19   :  { %v227_v23 = vpop.f32.mrb[7].mxu0 }
 0xc1a   :  { %v228_v27 = vadd.f32 %v1341_v28, %v227_v23 }
 0xc76   :  { %v598_v3 = vpop.f32.mrb[16].mxu1 }
 0xc77   :  { %v604_v4 = vadd.f32 %v598_v3, %v225_v1  ;;  %v1046_v5 = vpop.f32.mrb[17].mxu1  ;;  %v236_v3 = vadd.f32 %v1418_v0, %v1341_v28  ;;  %v945_v28 = vld [vmem:[%s1470_s4] ss:$0 sm:$0xff]  ;;  %s1219_s4 = smov [#allocation7]  }
 0xc78   :  { %v601_v6 = vpop.f32.mrb[18].mxu1 }
 0xc79   :  { %1126 = vtanh.f32 %v604_v4  ;;  %v1047_v7 = vpop.f32.mrb[19].mxu1  ;;  %v938_v9 = vmul.f32 -1.442695, %v604_v4 }
 0xc7b   :  { %1128 = vpow2.f32 %v938_v9 }
 0xc83   :  { %v1127_v8 = vpop.eup %1126 }
 0xc84   :  { %614 = vrot.lane.b32.xlu0 %v1127_v8, %s1211_s8 }
 0xc85   :  { %v1129_v11 = vpop.eup %1128 }
 0xc86   :  { %v608_v13 = vadd.f32 1.0, %v1129_v11 }
 0xc88   :  { %1130 = vrcp.f32 %v608_v13 }
 0xc92   :  { %v1131_v14 = vpop.eup %1130 }
 0xc93   :  { %v612_v17 = vmul.f32 %v1131_v14, %v548_v51 }
 0xcf6   :  { %v615_v15 = vpop.permute.xlu0 %614 }
 0xcf7   :  { %v617_v16 = vmul.f32 %v1131_v14, %v615_v15 }
 0xcf9   :  { %619 = vrot.lane.b32.xlu1 %v617_v16, %s1217_s3 }
 0xd6b   :  { %v620_v18 = vpop.permute.xlu1 %619 }
 0xd6c   :  { %v622_v19 = vadd.f32 %v620_v18, %v612_v17 }
 0xd6e   :  { %1132 = vtanh.f32 %v622_v19 }
 0xd78   :  { %v1133_v21 = vpop.eup %1132 }
 0xd79   :  { %625 = vrot.lane.b32.xlu0 %v1133_v21, %s1211_s8 }
 0xdeb   :  { %v626_v22 = vpop.permute.xlu0 %625 }
 0xdec   :  { %v628_v24 = vmul.f32 %v1131_v14, %v626_v22 }
 0xdee   :  { %v631_v25 = vpack.c.bf16 %v628_v24, %v628_v24 }
 0xdf0   :  { %633 = vrot.lane.b32.xlu1 %v631_v25, %s1217_s3 }
 0xe62   :  { %v634_v26 = vpop.permute.xlu1 %633 }
 0xe63   :  { %1053 = vmatmul.mubr.msk.bf16.vlgmr.msra.gmra.mrb[8].mxu0 %vm264_vm7, %v634_v26 }
 0xe64   :  { %1065 = vmatpush3.bf16.msra.mxu0 %v1296_v10  ;;  %1068 = vmatprep.mubr.msk.bf16.mxu0 %vm1215_vm0, %v1214_v2 }
 0xe65   :  { %1066 = vmatprep.subr.bf16.mxu0 %v1214_v2 }
 0xe68   :  { %1067 = vmatpush3.bf16.msra.mxu0 %v1302_v12 }
 0xf36   :  { %v672_v29 = vpop.f32.mrb[8].mxu0 }
 0xf37   :  { %v678_v30 = vadd.f32 %v672_v29, %v228_v27  ;;  %v1054_v31 = vpop.f32.mrb[9].mxu0 }
 0xf38   :  { %v675_v33 = vpop.f32.mrb[10].mxu0 }
 0xf39   :  { %1134 = vtanh.f32 %v678_v30  ;;  %v1055_v34 = vpop.f32.mrb[11].mxu0  ;;  %v940_v36 = vmul.f32 -1.442695, %v678_v30  ;;  %v946_v30 = vld [vmem:[#allocation3] ss:$0 sm:$0xff] }
 0xf3b   :  { %1136 = vpow2.f32 %v940_v36 }
 0xf43   :  { %v1135_v35 = vpop.eup %1134 }
 0xf44   :  { %688 = vrot.lane.b32.xlu0 %v1135_v35, %s1211_s8 }
 0xf45   :  { %v1137_v10 = vpop.eup %1136 }
 0xf46   :  { %v682_v37 = vadd.f32 1.0, %v1137_v10 }
 0xf48   :  { %1138 = vrcp.f32 %v682_v37 }
 0xf52   :  { %v1139_v38 = vpop.eup %1138 }
 0xf53   :  { %v686_v12 = vmul.f32 %v1139_v38, %v622_v19 }
 0xfb6   :  { %v689_v2 = vpop.permute.xlu0 %688 }
 0xfb7   :  { %v691_v39 = vmul.f32 %v1139_v38, %v689_v2 }
 0xfb9   :  { %693 = vrot.lane.b32.xlu1 %v691_v39, %s1217_s3 }
0x102b   :  { %v694_v40 = vpop.permute.xlu1 %693 }
0x102c   :  { %v696_v41 = vadd.f32 %v694_v40, %v686_v12 }
0x102e   :  { %1140 = vtanh.f32 %v696_v41 }
0x1038   :  { %v1141_v42 = vpop.eup %1140 }
0x1039   :  { %699 = vrot.lane.b32.xlu0 %v1141_v42, %s1211_s8 }
0x10ab   :  { %v700_v43 = vpop.permute.xlu0 %699 }
0x10ac   :  { %v702_v44 = vmul.f32 %v1139_v38, %v700_v43 }
0x10ae   :  { %v705_v45 = vpack.c.bf16 %v702_v44, %v702_v44 }
0x10b0   :  { %707 = vrot.lane.b32.xlu1 %v705_v45, %s1217_s3 }
0x1122   :  { %v708_v46 = vpop.permute.xlu1 %707 }
0x1123   :  { %1061 = vmatmul.mubr.msk.bf16.vlgmr.msra.gmra.mrb[20].mxu1 %vm264_vm7, %v708_v46 }
0x11f6   :  { %v746_v32 = vpop.f32.mrb[20].mxu1 }
0x11f7   :  { %v752_v48 = vadd.f32 %v746_v32, %v233_v47  ;;  %v1062_v49 = vpop.f32.mrb[21].mxu1 }
0x11f8   :  { %v749_v50 = vpop.f32.mrb[22].mxu1 }
0x11f9   :  { %1142 = vtanh.f32 %v752_v48  ;;  %v1063_v51 = vpop.f32.mrb[23].mxu1  ;;  %v942_v53 = vmul.f32 -1.442695, %v752_v48 }
0x11fb   :  { %1144 = vpow2.f32 %v942_v53 }
0x1203   :  { %v1143_v52 = vpop.eup %1142 }
0x1204   :  { %762 = vrot.lane.b32.xlu0 %v1143_v52, %s1211_s8 }
0x1205   :  { %v1145_v54 = vpop.eup %1144 }
0x1206   :  { %v756_v55 = vadd.f32 1.0, %v1145_v54 }
0x1208   :  { %1146 = vrcp.f32 %v756_v55 }
0x1212   :  { %v1147_v56 = vpop.eup %1146 }
0x1213   :  { %v760_v59 = vmul.f32 %v1147_v56, %v696_v41 }
0x1276   :  { %v763_v57 = vpop.permute.xlu0 %762 }
0x1277   :  { %v765_v58 = vmul.f32 %v1147_v56, %v763_v57 }
0x1279   :  { %767 = vrot.lane.b32.xlu1 %v765_v58, %s1217_s3 }
0x12eb   :  { %v768_v60 = vpop.permute.xlu1 %767 }
0x12ec   :  { %v770_v61 = vadd.f32 %v768_v60, %v760_v59 }
0x12ee   :  { %1148 = vtanh.f32 %v770_v61 }
0x12f8   :  { %v1149_v62 = vpop.eup %1148 }
0x12f9   :  { %773 = vrot.lane.b32.xlu0 %v1149_v62, %s1211_s8 }
0x136b   :  { %v774_v63 = vpop.permute.xlu0 %773 }
0x136c   :  { %v776_v20 = vmul.f32 %v1147_v56, %v774_v63 }
0x136e   :  { %v779_v23 = vpack.c.bf16 %v776_v20, %v776_v20 }
0x1370   :  { %781 = vrot.lane.b32.xlu1 %v779_v23, %s1217_s3 }
0x13e2   :  { %v782_v1 = vpop.permute.xlu1 %781 }
0x13e3   :  { %1069 = vmatmul.mubr.msk.bf16.vlgmr.msra.gmra.mrb[12].mxu0 %vm264_vm7, %v782_v1 }
0x14b6   :  { %v820_v4 = vpop.f32.mrb[12].mxu0 }
0x14b7   :  { %v826_v5 = vadd.f32 %v820_v4, %v236_v3  ;;  %v1070_v6 = vpop.f32.mrb[13].mxu0 }
0x14b8   :  { %v823_v7 = vpop.f32.mrb[14].mxu0 }
0x14b9   :  { %1150 = vtanh.f32 %v826_v5  ;;  %v1071_v8 = vpop.f32.mrb[15].mxu0  ;;  %v944_v11 = vmul.f32 -1.442695, %v826_v5 }
0x14bb   :  { %1152 = vpow2.f32 %v944_v11 }
0x14c3   :  { %v1151_v9 = vpop.eup %1150 }
0x14c4   :  { %836 = vrot.lane.b32.xlu0 %v1151_v9, %s1211_s8 }
0x14c5   :  { %v1153_v13 = vpop.eup %1152 }
0x14c6   :  { %v830_v14 = vadd.f32 1.0, %v1153_v13 }
0x14c8   :  { %1154 = vrcp.f32 %v830_v14 }
0x14d2   :  { %v1155_v15 = vpop.eup %1154 }
0x14d3   :  { %v834_v0 = vmul.f32 %v1155_v15, %v770_v61 }
0x1536   :  { %v837_v16 = vpop.permute.xlu0 %836 }
0x1537   :  { %v839_v17 = vmul.f32 %v1155_v15, %v837_v16 }
0x1539   :  { %841 = vrot.lane.b32.xlu1 %v839_v17, %s1217_s3 }
0x153d   :  { %857 = vrot.lane.b32.xlu1 %v945_v28, %s1218_s20 }
0x15ab   :  { %v842_v18 = vpop.permute.xlu1 %841 }
0x15ac   :  { %v844_v19 = vadd.f32 %v842_v18, %v834_v0 }
0x15ae   :  { %1156 = vtanh.f32 %v844_v19 }
0x15af   :  { %v858_v24 = vpop.permute.xlu1 %857 }
0x15b8   :  { %v1157_v21 = vpop.eup %1156 }
0x15b9   :  { %847 = vrot.lane.b32.xlu0 %v1157_v21, %s1211_s8  ;;  %s894_s8 = sshll.u32 %s1219_s4, 4  ;;  %s895_s8 = int_to_ptr.vmem [resolvable:$true] %s894_s8 }
0x15ba   :  { %s1184_s21 = scalar_lea.vmem %s895_s8, 128  ;;  %p1189_p9 = scmp.lt.s32.totalorder %s895_s8, %s895_s8 }
0x15bb   :  { %p1185_p8 = scmp.ne.s32.totalorder %s895_s8, %s1184_s21  ;;  %p1190_p10 = scmp.lt.s32.totalorder %s1184_s21, %s1184_s21 }
0x15bd   :  { %p1191_p11 = por %p1190_p10, %p1189_p9 }
0x15bf   :  { %p1192_p12 = pnand %p1191_p11, %p1185_p8 }
0x162b   :  { %v848_v22 = vpop.permute.xlu0 %847 }
0x162c   :  { %v850_v25 = vmul.f32 %v1155_v15, %v848_v22 }
0x162e   :  { %v860_v26 = vmul.f32 %v858_v24, %v850_v25 }
0x1630   :  { %862 = vrot.lane.b32.xlu0 %v860_v26, %s1217_s3 }
0x16a2   :  { %v863_v27 = vpop.permute.xlu0 %862 }
0x16a3   :  { %v865_v29 = vsel %vm264_vm7, %v863_v27, 0.0 }
0x16a4   :  { %866 = vadd.xlane.f32.xlu1 %v865_v29 }
0x1731   :  { %v867_v31 = vpop.xlane.xlu1 %866 }
0x1732   :  { %v875_v33 = vadd.f32 %v946_v30, %v867_v31 }
0x1734   :  { %v947_v34 = vmul.f32 -1.442695, %v875_v33 }
0x1736   :  { %1158 = vpow2.f32 %v947_v34 }
0x1740   :  { %v1159_v35 = vpop.eup %1158 }
0x1741   :  { %v879_v36 = vadd.f32 1.0, %v1159_v35 }
0x1743   :  { %1160 = vrcp.f32 %v879_v36 }
0x174d   :  { %v1161_v10 = vpop.eup %1160 }
0x174e   :  { %884 = vperm.xlu0 %1082, %v1161_v10  }
0x17cd   :  { %v885_v37 = vpop.permute.xlu0 %884 }
0x17ce   :  { %887 = vst [vmem:[#allocation7] sm:$0xff] %v885_v37 }
0x17cf   :  { %1195 = shalt.err (!%p1192_p12)
}
0x17d0   :  { %s1196_s24 = scalar_lea.hbm %s1472_s6, 128 }
0x17d1   :  { %p1197_p13 = scmp.ne.s32.totalorder %s1472_s6, %s1196_s24  ;;  %p1200_p0 = scmp.lt.u32.totalorder %s1196_s24, %s1472_s6 }
0x17d3   :  { %p1202_p1 = pnand %p1200_p0, %p1197_p13 }
0x17d5   :  { %1205 = shalt.err (!%p1202_p1)
}
0x17d6   :  { %897 = dma.vmem_to_hbm [thread:$0]  %s895_s8, 128, %s1472_s6, [#allocation6]  }
0x17d7   :  { %1208 = dma.done.wait [#allocation6], 128  }
0x17d8   :  { %1209 = vsyncadd [#allocation6], 4294967168 }
0x17d9   :  { %901 = vsyncpa [#allocation5], 1 }
0x17da   :  { %902 = vsyncpa [#allocation6], 1 }

</bundles_post_ra>
